<compile_context>
chip_gen: v5e
topology: v5e:2x2
jax: 0.10.0
libtpu: 0.0.40
codegen_flags: <defaults>
</compile_context>

<pallas_src>
import jax
import jax.numpy as jnp
from jax.experimental import pallas as pl
from jax.experimental.pallas import tpu as pltpu


def _make_identity_dma_kernel(chunk_sizes):
    """Build a kernel issuing one HBM->HBM DMA per (static) leading-axis chunk."""
    starts = []
    off = 0
    for c in chunk_sizes:
        starts.append(off)
        off += c

    def kernel(x_hbm, o_hbm, sems):
        if len(chunk_sizes) == 1:
            # Single DMA over the whole array (any rank / dtype / shape).
            cp = pltpu.make_async_copy(x_hbm, o_hbm, sems.at[0])
            cp.start()
            cp.wait()
            return
        # Multi-chunk path: issue every DMA before waiting on any of them so
        # multiple DMA queues run concurrently.
        copies = []
        for i, (start, size) in enumerate(zip(starts, chunk_sizes)):
            cp = pltpu.make_async_copy(
                x_hbm.at[pl.ds(start, size)],
                o_hbm.at[pl.ds(start, size)],
                sems.at[i],
            )
            cp.start()
            copies.append(cp)
        for cp in copies:
            cp.wait()

    return kernel


def _plan_chunks(leading_dim, total_bytes, max_chunks, min_chunk_bytes):
    """Split the leading axis into at most `max_chunks` ~equal static chunks."""
    if leading_dim <= 1 or total_bytes <= min_chunk_bytes:
        return (leading_dim,)
    n = int(min(max_chunks, leading_dim, max(1, total_bytes // min_chunk_bytes)))
    if n <= 1:
        return (leading_dim,)
    base, rem = divmod(leading_dim, n)
    return tuple(base + (1 if i < rem else 0) for i in range(n))


def identity(x, *, max_chunks=8, min_chunk_bytes=1 << 20):
    """Identity forward pass: returns a copy of x (same shape, same dtype)."""
    if x.size == 0:
        return x  # nothing to copy

    orig_shape = x.shape
    xin = x if x.ndim >= 1 else x.reshape(1)

    if xin.ndim >= 2:
        chunk_sizes = _plan_chunks(
            xin.shape[0], xin.size * xin.dtype.itemsize, max_chunks, min_chunk_bytes
        )
    else:
        chunk_sizes = (xin.shape[0],)  # 1-D: always a single full-ref DMA

    kernel = _make_identity_dma_kernel(chunk_sizes)

    out = pl.pallas_call(
        kernel,
        out_shape=jax.ShapeDtypeStruct(xin.shape, xin.dtype),
        in_specs=[pl.BlockSpec(memory_space=pl.ANY)],   # stay in HBM; no auto-DMA
        out_specs=pl.BlockSpec(memory_space=pl.ANY),    # stay in HBM; no auto-DMA
        scratch_shapes=[pltpu.SemaphoreType.DMA((len(chunk_sizes),))],
    )(xin)

    return out.reshape(orig_shape)


if __name__ == "__main__":
    key = jax.random.PRNGKey(0)

    # Primary check: NCHW f32 input, matches the module's typical usage.
    x = jax.random.normal(key, (2, 4, 16, 16), dtype=jnp.float32)
    y = identity(x)
    jax.block_until_ready(y)
    assert y.shape == x.shape and y.dtype == x.dtype
    assert bool(jnp.all(y == x))

    # Dtype-agnostic: bf16 copied as-is (no padding, no bitcast, pure DMA).
    xb = jax.random.normal(key, (2, 4, 16, 16), dtype=jnp.bfloat16)
    yb = identity(xb)
    jax.block_until_ready(yb)
    assert yb.shape == xb.shape and yb.dtype == xb.dtype
    assert bool(jnp.all(yb == xb))

    # Non-128-aligned shape: no wrapper-side pad / slice copies.
    xo = jax.random.normal(key, (3, 5, 7), dtype=jnp.float32)
    yo = identity(xo)
    jax.block_until_ready(yo)
    assert yo.shape == xo.shape and bool(jnp.all(yo == xo))

    # Exercise the multi-chunk (concurrent DMA) path at a small size.
    xc = jax.random.normal(key, (8, 64, 128), dtype=jnp.float32)
    yc = identity(xc, min_chunk_bytes=8 * 1024)
    jax.block_until_ready(yc)
    assert yc.shape == xc.shape and bool(jnp.all(yc == xc))

    print("KERNEL_OK")
</pallas_src>

<mosaic_0001>
module attributes {stable_mosaic.version = 11 : i64} {
  func.func @kernel(%arg0: memref<2x4x16x16xf32, #tpu.memory_space<any>>, %arg1: memref<2x4x16x16xf32, #tpu.memory_space<any>>, %arg2: memref<1x!tpu.dma_semaphore, #tpu.memory_space<semaphore_mem>>) attributes {dimension_semantics = [], scalar_prefetch = 0 : i64, scratch_operands = 1 : i64, tpu.core_type = #tpu.core_type<tc>} {
    %c0_i32 = arith.constant 0 : i32
    %0 = tpu.memref_slice %arg2[%c0_i32] : memref<1x!tpu.dma_semaphore, #tpu.memory_space<semaphore_mem>> -> memref<1x!tpu.dma_semaphore, #tpu.memory_space<semaphore_mem>>
    %1 = tpu.memref_squeeze %0 : memref<1x!tpu.dma_semaphore, #tpu.memory_space<semaphore_mem>> -> memref<!tpu.dma_semaphore, #tpu.memory_space<semaphore_mem>>
    tpu.enqueue_dma source(%arg0 : memref<2x4x16x16xf32, #tpu.memory_space<any>>) target(%arg1 : memref<2x4x16x16xf32, #tpu.memory_space<any>>) target_semaphore(%1 : memref<!tpu.dma_semaphore, #tpu.memory_space<semaphore_mem>>)
    %c0_i32_0 = arith.constant 0 : i32
    %2 = tpu.memref_slice %arg2[%c0_i32_0] : memref<1x!tpu.dma_semaphore, #tpu.memory_space<semaphore_mem>> -> memref<1x!tpu.dma_semaphore, #tpu.memory_space<semaphore_mem>>
    %3 = tpu.memref_squeeze %2 : memref<1x!tpu.dma_semaphore, #tpu.memory_space<semaphore_mem>> -> memref<!tpu.dma_semaphore, #tpu.memory_space<semaphore_mem>>
    tpu.wait_dma2 semaphore(%3 : memref<!tpu.dma_semaphore, #tpu.memory_space<semaphore_mem>>) src(%arg0 : memref<2x4x16x16xf32, #tpu.memory_space<any>>) dst(%arg1 : memref<2x4x16x16xf32, #tpu.memory_space<any>>)
    return
  }
}

</mosaic_0001>

<bundles_post_ra>
// kernel: tpu_custom_call.1
= control target key start
LH: loop header
LB: loop body
LE: loop exit
PB: predicated region body
PF: predicated region fallthrough
CT: control target
= control target key end

     0   :  { %s34_s12 = smov [#allocation2]   ;;  %s35_s13 = smov [#allocation3]   ;;  %s53_s0 = inlined_call_operand.hbm [shape: f32[2,4,16,16], index: 0, kind: input, shape index: {}]   ;;  %s54_s1 = inlined_call_operand.hbm [shape: f32[2,4,16,16], index: 1, kind: output, shape index: {}]  }
   0x1   :  { %s10_s8 = sshll.u32 %s53_s0, 4  ;;  %s12_s11 = sshll.u32 %s54_s1, 4  ;;  %s11_s8 = int_to_ptr.hbm [resolvable:$true] %s10_s8  ;;  %s13_s11 = int_to_ptr.hbm [resolvable:$true] %s12_s11 }
   0x2   :  { %s36_s14 = smov 0  }
   0x3   :  { %16 = dma.general %s11_s8, 2048, %s13_s11, %s34_s12, %s35_s13, [#allocation4], %s36_s14, 0  }
   0x4   :  { %32 = dma.done.wait [#allocation2], 2048 }
   0x5   :  { %33 = vsyncadd [#allocation2], 4294965248 }
   0x6   :  { %22 = vsyncmov [#allocation2] }
   0x9   :  { %s23_s15 = vpop.sfrf %22 }
   0xa   :  { %p28_p0 = scmp.ne.s32.totalorder %s23_s15, 0 }
   0xc   :  { %27 = shalt.err (%p28_p0)  }

</bundles_post_ra>
